<compile_context>
chip_gen: v7x
topology: tpu7x:2x2x1
jax: 0.10.0
libtpu: 0.0.40
codegen_flags: <defaults>
</compile_context>

<pallas_src>
import functools

import jax
import jax.numpy as jnp
from jax.experimental import pallas as pl
from jax.experimental.pallas import tpu as pltpu

HIDDEN = 128


def _critic_kernel(x_ref, w1_ref, b1_ref, w2_ref, b2_ref, v_ref, *,
                   mxu_dtype, tanh_dtype):
    # x:  (bt, S)      w1: (S, 128)    b1: (1, 128)
    # w2: (128, 1)     b2: (1, 1) in SMEM             v: (bt, 1)
    x = x_ref[...].astype(mxu_dtype)
    w1 = w1_ref[...].astype(mxu_dtype)

    # fc1: MXU matmul with f32 accumulation; bias add on VPU, tanh on EUP.
    h = jnp.dot(x, w1, preferred_element_type=jnp.float32) + b1_ref[...]
    h = jnp.tanh(h.astype(tanh_dtype))

    # fc4 value head: the MXU has huge slack (fc1 has K=32), so run the
    # 128->1 contraction there instead of a VPU mul + XLU lane reduce.
    v = jnp.dot(h, w2_ref[...].astype(h.dtype),
                preferred_element_type=jnp.float32) + b2_ref[0, 0]
    v_ref[...] = v.astype(v_ref.dtype)


def critic_forward(x, w1, b1, w2_row, b2, *, b_tile=4096,
                   mxu_dtype=None, tanh_dtype=jnp.float32):
    """v = tanh(x @ w1 + b1) @ w2 + b2.

    x: (B, S), w1: (S, 128), b1: (1, 128),
    w2_row: (1, 128)  (same layout as PyTorch fc4.weight), b2: (1, 1).
    Returns (B, 1) f32.
    """
    B, S = x.shape
    if mxu_dtype is None:
        mxu_dtype = x.dtype  # bf16 x stays bf16 on the MXU (f32 accumulation).

    # Batch tile: large (amortize per-step pipeline overhead), multiple of 8,
    # but small enough that the grid keeps >= 2 steps and VMEM stays bounded.
    bt = min(int(b_tile), max(1, -(-B // 2)))
    bt = max(8, (bt // 8) * 8)
    bt = min(bt, 16384)
    grid = (pl.cdiv(B, bt),)  # ragged last block handled by Pallas masking.

    # (128, 1) column layout for the MXU head; one-time, negligible cost.
    w2_col = w2_row.T

    # Scoped-VMEM budget: x and out tiles are lane-padded to 128 lanes in
    # VMEM, each double-buffered; weights are ~0.2 MiB.  Clamp to 48 MiB so
    # we never exceed v7x's 64 MiB physical VMEM.
    bytes_per_buf = bt * 128 * 4
    vmem_need = 4 * bytes_per_buf + (2 << 20)
    vmem_limit = int(min(max(vmem_need, 16 << 20), 48 << 20))

    kernel = functools.partial(_critic_kernel, mxu_dtype=mxu_dtype,
                               tanh_dtype=tanh_dtype)

    out = pl.pallas_call(
        kernel,
        out_shape=jax.ShapeDtypeStruct((B, 1), jnp.float32),
        grid_spec=pltpu.PrefetchScalarGridSpec(
            num_scalar_prefetch=0,
            grid=grid,
            in_specs=[
                # x: streamed tile-by-tile (double-buffered by Pallas).
                pl.BlockSpec((bt, S), lambda i: (i, 0)),
                # Weights/biases: constant block index -> VMEM-resident.
                pl.BlockSpec((S, HIDDEN), lambda i: (0, 0)),
                pl.BlockSpec((1, HIDDEN), lambda i: (0, 0)),
                pl.BlockSpec((HIDDEN, 1), lambda i: (0, 0)),
                # b2: scalar parameter in SMEM.
                pl.BlockSpec(memory_space=pltpu.MemorySpace.SMEM),
            ],
            out_specs=pl.BlockSpec((bt, 1), lambda i: (i, 0)),
        ),
        compiler_params=pltpu.CompilerParams(
            # Batch tiles are independent -> megacore sharding on v7x,
            # DMA/compute overlap everywhere.
            dimension_semantics=("parallel",),
            vmem_limit_bytes=vmem_limit,
        ),
    )(x, w1, b1, w2_col, b2)
    return out


def init_params(key, state_num, action_num):
    # Deterministic init mimicking PyTorch nn.Linear default:
    # U(-1/sqrt(fan_in), 1/sqrt(fan_in)).  action_num is unused by the critic.
    k1, k2, k3, k4 = jax.random.split(key, 4)
    lim1 = 1.0 / jnp.sqrt(jnp.float32(state_num))
    lim2 = 1.0 / jnp.sqrt(jnp.float32(HIDDEN))
    w1 = jax.random.uniform(k1, (state_num, HIDDEN), jnp.float32, -lim1, lim1)
    b1 = jax.random.uniform(k2, (1, HIDDEN), jnp.float32, -lim1, lim1)
    w2_row = jax.random.uniform(k3, (1, HIDDEN), jnp.float32, -lim2, lim2)
    b2 = jax.random.uniform(k4, (1, 1), jnp.float32, -lim2, lim2)
    return w1, b1, w2_row, b2


def reference_forward(x, w1, b1, w2_row, b2):
    h = jnp.tanh(jnp.dot(x, w1, precision=jax.lax.Precision.HIGHEST) + b1)
    return jnp.dot(h, w2_row.T, precision=jax.lax.Precision.HIGHEST) + b2


if __name__ == "__main__":
    key = jax.random.PRNGKey(0)
    kx, kp = jax.random.split(key)

    batch = 13        # not tile-aligned: exercises the ragged last grid block
    state_num = 32
    action_num = 4    # unused by critic's forward

    x = jax.random.normal(kx, (batch, state_num), jnp.float32)
    w1, b1, w2_row, b2 = init_params(kp, state_num, action_num)

    # Default tile logic gives bt=8 -> a 2-step grid at this demo size;
    # production batches stream 4096-row tiles.
    v = critic_forward(x, w1, b1, w2_row, b2)
    v = jax.block_until_ready(v)

    v_ref = reference_forward(x, w1, b1, w2_row, b2)
    assert v.shape == (batch, 1)
    # Tolerance accounts for MXU f32 multi-pass vs. XLA HIGHEST-precision dot.
    assert jnp.allclose(v, v_ref, atol=1e-4, rtol=1e-4)

    print("KERNEL_OK")
</pallas_src>

<mosaic_0001>
module attributes {stable_mosaic.version = 11 : i64} {
  func.func @_critic_kernel(%arg0: i32, %arg1: memref<8x32xf32, #tpu.memory_space<vmem>>, %arg2: memref<32x128xf32, #tpu.memory_space<vmem>>, %arg3: memref<1x128xf32, #tpu.memory_space<vmem>>, %arg4: memref<128x1xf32, #tpu.memory_space<vmem>>, %arg5: memref<1x1xf32, #tpu.memory_space<smem>>, %arg6: memref<8x1xf32, #tpu.memory_space<vmem>>) attributes {dimension_semantics = [#tpu.dimension_semantics<parallel>], iteration_bounds = array<i64: 2>, scalar_prefetch = 0 : i64, scratch_operands = 0 : i64, tpu.core_type = #tpu.core_type<tc>, window_params = [{transform_indices = @transform_0, window_bounds = array<i64: 8, 32>}, {pipeline_mode = #tpu.pipeline_mode<synchronous>, transform_indices = @transform_1, window_bounds = array<i64: 32, 128>}, {pipeline_mode = #tpu.pipeline_mode<synchronous>, transform_indices = @transform_2, window_bounds = array<i64: 1, 128>}, {pipeline_mode = #tpu.pipeline_mode<synchronous>, transform_indices = @transform_3, window_bounds = array<i64: 128, 1>}, {transform_indices = @transform_4, window_bounds = array<i64: 1, 1>}, {transform_indices = @transform_5, window_bounds = array<i64: 8, 1>}]} {
    %c0 = arith.constant 0 : index
    %c0_0 = arith.constant 0 : index
    %0 = vector.load %arg1[%c0, %c0_0] : memref<8x32xf32, #tpu.memory_space<vmem>>, vector<8x32xf32>
    %c0_1 = arith.constant 0 : index
    %c0_2 = arith.constant 0 : index
    %1 = vector.load %arg2[%c0_1, %c0_2] : memref<32x128xf32, #tpu.memory_space<vmem>>, vector<32x128xf32>
    %cst = arith.constant dense<0.000000e+00> : vector<8x128xf32>
    %2 = tpu.matmul %0, %1, %cst {dimension_numbers = #tpu.dot_dimension_numbers<[1], [0], [0], [1], [0, 0, 1, 1], [], []>} : vector<8x32xf32>, vector<32x128xf32>, vector<8x128xf32> -> vector<8x128xf32>
    %c0_3 = arith.constant 0 : index
    %c0_4 = arith.constant 0 : index
    %3 = vector.load %arg3[%c0_3, %c0_4] : memref<1x128xf32, #tpu.memory_space<vmem>>, vector<1x128xf32>
    %4 = vector.broadcast %3 : vector<1x128xf32> to vector<8x128xf32>
    %5 = arith.addf %2, %4 : vector<8x128xf32>
    %6 = math.tanh %5 : vector<8x128xf32>
    %c0_5 = arith.constant 0 : index
    %c0_6 = arith.constant 0 : index
    %7 = vector.load %arg4[%c0_5, %c0_6] : memref<128x1xf32, #tpu.memory_space<vmem>>, vector<128x1xf32>
    %cst_7 = arith.constant dense<0.000000e+00> : vector<8x1xf32>
    %8 = tpu.matmul %6, %7, %cst_7 {dimension_numbers = #tpu.dot_dimension_numbers<[1], [0], [0], [1], [0, 0, 1, 1], [], []>} : vector<8x128xf32>, vector<128x1xf32>, vector<8x1xf32> -> vector<8x1xf32>
    %c0_8 = arith.constant 0 : index
    %c0_9 = arith.constant 0 : index
    %9 = memref.load %arg5[%c0_8, %c0_9] : memref<1x1xf32, #tpu.memory_space<smem>>
    %10 = vector.broadcast %9 : f32 to vector<8x1xf32>
    %11 = arith.addf %8, %10 : vector<8x1xf32>
    %c0_10 = arith.constant 0 : index
    %c0_11 = arith.constant 0 : index
    %12 = vector.load %arg6[%c0_10, %c0_11] : memref<8x1xf32, #tpu.memory_space<vmem>>, vector<8x1xf32>
    tpu.vector_store %arg6[%c0_10, %c0_11], %11 {strides = array<i32>} : memref<8x1xf32, #tpu.memory_space<vmem>>, vector<8x1xf32>,
    return
  }
  func.func @transform_0(%arg0: i32) -> (i32, i32) {
    %c0_i32 = arith.constant 0 : i32
    %c0_i32_0 = arith.constant 0 : i32
    return %arg0, %c0_i32 : i32, i32
  }
  func.func @transform_1(%arg0: i32) -> (i32, i32) {
    %c0_i32 = arith.constant 0 : i32
    %c0_i32_0 = arith.constant 0 : i32
    %c0_i32_1 = arith.constant 0 : i32
    return %c0_i32, %c0_i32_0 : i32, i32
  }
  func.func @transform_2(%arg0: i32) -> (i32, i32) {
    %c0_i32 = arith.constant 0 : i32
    %c0_i32_0 = arith.constant 0 : i32
    %c0_i32_1 = arith.constant 0 : i32
    return %c0_i32, %c0_i32_0 : i32, i32
  }
  func.func @transform_3(%arg0: i32) -> (i32, i32) {
    %c0_i32 = arith.constant 0 : i32
    %c0_i32_0 = arith.constant 0 : i32
    %c0_i32_1 = arith.constant 0 : i32
    return %c0_i32, %c0_i32_0 : i32, i32
  }
  func.func @transform_4(%arg0: i32) -> (i32, i32) {
    %c0_i32 = arith.constant 0 : i32
    %c0_i32_0 = arith.constant 0 : i32
    %c0_i32_1 = arith.constant 0 : i32
    return %c0_i32, %c0_i32_0 : i32, i32
  }
  func.func @transform_5(%arg0: i32) -> (i32, i32) {
    %c0_i32 = arith.constant 0 : i32
    %c0_i32_0 = arith.constant 0 : i32
    return %arg0, %c0_i32 : i32, i32
  }
}

</mosaic_0001>

<bundles_post_ra>
// kernel: tpu_custom_call.1
= control target key start
LH: loop header
LB: loop body
LE: loop exit
PB: predicated region body
PF: predicated region fallthrough
CT: control target
= control target key end

     0   :  { %s617_s20 = smov 0   ;;  %s704_s0 = inlined_call_operand.vmem [shape: f32[13,32], index: 0, kind: input, shape index: {}]   ;;  %s705_s1 = inlined_call_operand.vmem [shape: f32[32,128], index: 1, kind: input, shape index: {}]   ;;  %s706_s2 = inlined_call_operand.vmem [shape: f32[1,128], index: 2, kind: input, shape index: {}]   ;;  %s707_s3 = inlined_call_operand.vmem [shape: f32[128,1], index: 3, kind: input, shape index: {}]   ;;  %s708_s4 = inlined_call_operand.<no memory space> [shape: f32[1,1], index: 4, kind: input, shape index: {}]   ;;  %s709_s5 = inlined_call_operand.vmem [shape: f32[13,1], index: 5, kind: output, shape index: {}]  }
   0x1   :  { %10 = sst [smem:[#allocation2]] %s708_s4 }
   0x2 LB: > { %s451_s21 = sadd.s32 4294967295, %s579_s20   ;;  %p455_p0 = scmp.ge.s32.totalorder %s579_s20, 1  ;;  %s579_s20 = sphi %s617_s20, %s16_s20  }
   0x3   : > { %p187_p1 = scmp.lt.s32.totalorder %s579_s20, 3 }
   0x5   : > { %p188_p2 = pnand %p455_p0, %p187_p1 }
   0x6   : > { %v222_v0 = vld [vmem:[%s705_s1] sm:$0xff] (!%p188_p2)  ;;  %v223_v1 = vld [vmem:[%s705_s1 + $0x8] sm:$0xff] (!%p188_p2)  ;;  %v224_v2 = vld [vmem:[%s705_s1 + $0x10] sm:$0xff] (!%p188_p2)  ;;  %v581_v3 = vmov (!%p188_p2), 0.0|0.0   ;;  %vm582_vm0 = vmmov (!%p188_p2), 0   ;;  %v583_v6 = vmov (!%p188_p2), 0.0  }
   0x7   : > { %191 = sbr.rel (%p188_p2) target bundleno = 458 (0x1ca), region = 40  ;;  %530 = vmatprep.subr.bf16.mxu0 (!%p188_p2), %v581_v3  ;;  %v531_v4 = vpack.c.bf16 (!%p188_p2), %v223_v1, %v222_v0  ;;  %v225_v5 = vld [vmem:[%s705_s1 + $0x18] sm:$0xff] (!%p188_p2)  ;;  %492 = vmatprep.mubr.msk.f32.mxu0 (!%p188_p2), %vm582_vm0, %v583_v6  ;;  %p213_p3 = scmp.lt.s32.totalorder (!%p188_p2), %s451_s21, 1  ;;  %v308_v7 = vld [vmem:[%s707_s3] sm:$0xff] (!%p188_p2)  ;;  %v309_v8 = vld [vmem:[%s707_s3 + $0x8] sm:$0xff] (!%p188_p2)  ;;  %vm233_vm1 = vcmask (!%p188_p2), 261120  }
   0x8   : > { %536 = vmatprep.subr.bf16.mxu1 (!%p188_p2), %v581_v3  ;;  %v537_v9 = vpack.c.bf16 (!%p188_p2), %v309_v8, %v308_v7  ;;  %v310_v10 = vld [vmem:[%s707_s3 + $0x10] sm:$0xff] (!%p188_p2)  ;;  %v311_v11 = vld [vmem:[%s707_s3 + $0x18] sm:$0xff] (!%p188_p2)  ;;  %527 = vmatprep.mubr.msk.f32.mxu1 (!%p188_p2), %vm582_vm0, %v583_v6  ;;  %v534_v12 = vpack.c.bf16 (!%p188_p2), %v225_v5, %v224_v2  ;;  %v312_v14 = vld [vmem:[%s707_s3 + $0x20] sm:$0xff] (!%p188_p2)  ;;  %vm396_vm2 = vcmask (!%p188_p2), 7168  }
   0x9   : > { %532 = vmatpush3.bf16.msra.mxu0 (!%p188_p2), %v531_v4  ;;  %v540_v13 = vpack.c.bf16 (!%p188_p2), %v311_v11, %v310_v10  ;;  %v313_v15 = vld [vmem:[%s707_s3 + $0x28] sm:$0xff] (!%p188_p2)  ;;  %v314_v18 = vld [vmem:[%s707_s3 + $0x30] sm:$0xff] (!%p188_p2)  ;;  %v315_v19 = vld [vmem:[%s707_s3 + $0x38] sm:$0xff] (!%p188_p2) }
   0xa   : > { %533 = vmatprep.subr.bf16.mxu0 (!%p188_p2), %v581_v3  ;;  %538 = vmatpush3.bf16.msra.mxu1 (!%p188_p2), %v537_v9  ;;  %v543_v17 = vpack.c.bf16 (!%p188_p2), %v313_v15, %v312_v14  ;;  %v546_v20 = vpack.c.bf16 (!%p188_p2), %v315_v19, %v314_v18  ;;  %v316_v21 = vld [vmem:[%s707_s3 + $0x40] sm:$0xff] (!%p188_p2)  ;;  %v317_v22 = vld [vmem:[%s707_s3 + $0x48] sm:$0xff] (!%p188_p2)  ;;  %v318_v24 = vld [vmem:[%s707_s3 + $0x50] sm:$0xff] (!%p188_p2) }
   0xb   : > { %539 = vmatprep.subr.bf16.mxu1 (!%p188_p2), %v581_v3  ;;  %v549_v23 = vpack.c.bf16 (!%p188_p2), %v317_v22, %v316_v21  ;;  %v319_v25 = vld [vmem:[%s707_s3 + $0x58] sm:$0xff] (!%p188_p2)  ;;  %v320_v27 = vld [vmem:[%s707_s3 + $0x60] sm:$0xff] (!%p188_p2)  ;;  %v321_v28 = vld [vmem:[%s707_s3 + $0x68] sm:$0xff] (!%p188_p2) }
   0xc   : > { %v552_v26 = vpack.c.bf16 (!%p188_p2), %v319_v25, %v318_v24  ;;  %v555_v29 = vpack.c.bf16 (!%p188_p2), %v321_v28, %v320_v27  ;;  %v322_v30 = vld [vmem:[%s707_s3 + $0x70] sm:$0xff] (!%p188_p2)  ;;  %v323_v31 = vld [vmem:[%s707_s3 + $0x78] sm:$0xff] (!%p188_p2)  ;;  %v458_v33 = vld [vmem:[%s706_s2] ss:$0 sm:$0xff] (!%p188_p2) }
   0xd   : > { %535 = vmatpush3.bf16.msra.mxu0 (!%p188_p2), %v534_v12  ;;  %v558_v32 = vpack.c.bf16 (!%p188_p2), %v323_v31, %v322_v30 }
   0xe   : > { %s711_s21 = smov (!%p213_p3, %s451_s21), 1  ;;  %541 = vmatpush3.bf16.msra.mxu1 %v540_v13 }
   0xf   : > { %s456_s12 = sshll.u32 %s711_s21, 3  ;;  %542 = vmatprep.subr.bf16.mxu1 %v581_v3 }
  0x10   : > { %s216_s19 = scalar_lea.vmem %s704_s0, %s456_s12  ;;  %s220_s4 = scalar_lea.vmem %s709_s5, %s456_s12 }
  0x11   : > { %v221_v16 = vld [vmem:[%s216_s19] sm:$0xff]  ;;  %s324_s19 = sld [smem:[#allocation2]] }
  0x12   : > { %493 = vmatmul.mubr.msk.f32.vlgmr.msra.gmra.mrb[0].mxu0 %vm233_vm1, %v221_v16  ;;  %544 = vmatpush3.bf16.msra.mxu1 %v543_v17 }
  0x13   : > { %545 = vmatprep.subr.bf16.mxu1 %v581_v3 }
  0x16   : > { %547 = vmatpush3.bf16.msra.mxu1 %v546_v20 }
  0x17   : > { %548 = vmatprep.subr.bf16.mxu1 %v581_v3  ;;  %v325_v38 = vstv %s324_s19 }
  0x1a   : > { %550 = vmatpush3.bf16.msra.mxu1 %v549_v23 }
  0x1b   : > { %551 = vmatprep.subr.bf16.mxu1 %v581_v3 }
  0x1e   : > { %553 = vmatpush3.bf16.msra.mxu1 %v552_v26 }
  0x1f   : > { %554 = vmatprep.subr.bf16.mxu1 %v581_v3 }
  0x22   : > { %556 = vmatpush3.bf16.msra.mxu1 %v555_v29 }
  0x23   : > { %557 = vmatprep.subr.bf16.mxu1 %v581_v3 }
  0x26   : > { %559 = vmatpush3.bf16.msra.mxu1 %v558_v32 }
  0xe5   : > { %v303_v34 = vpop.f32.mrb[0].mxu0 }
  0xe6   : > { %v304_v35 = vadd.f32 %v458_v33, %v303_v34  ;;  %v494_v36 = vpop.f32.mrb[1].mxu0 }
  0xe8   : > { %571 = vtanh.f32 %v304_v35 }
  0xf2   : > { %v572_v37 = vpop.eup %571 }
  0xf3   : > { %528 = vmatmul.mubr.f32.vlgmr.msra.gmra.mrb[0].mxu1 %v572_v37 }
 0x1c6   : > { %v392_v39 = vpop.f32.mrb[0].mxu1 }
 0x1c7   : > { %v393_v40 = vadd.f32 %v392_v39, %v325_v38  ;;  %v529_v41 = vpop.f32.mrb[1].mxu1 }
 0x1c9   : > { %397 = vst.msk [vmem:[%s220_s4] sm:$0xff] %vm396_vm2, %v393_v40 }
 0x1ca PF: > { %s16_s20 = sadd.s32 1, %s579_s20  }
 0x1cb   : > { %p13_p4 = scmp.ge.s32.totalorder %s16_s20, 4  }
 0x1cd   :  { %15 = sbr.rel (!%p13_p4) target bundleno = 2 (0x2), region = 70 }

</bundles_post_ra>
